<compile_context>
chip_gen: v5e
topology: v5e:2x2
jax: 0.10.0
libtpu: 0.0.40
codegen_flags: <defaults>
</compile_context>

<pallas_src>
import math
import numpy as np
import jax
import jax.numpy as jnp
from jax.experimental import pallas as pl
from jax.experimental.pallas import tpu as pltpu

# ---- hyperparameters the PyTorch module reads as globals ----
embedding_dimensions = 32
max_seq_len = 16

_SCALE = float(math.sqrt(embedding_dimensions))


# ---------- PE table: exact transcription of the torch double loop (numpy constant) ----------
def make_pe_table_np():
    pe = np.zeros((max_seq_len, embedding_dimensions), dtype=np.float32)
    for pos in range(max_seq_len):
        for i in range(0, embedding_dimensions, 2):
            angle = pos / 10000 ** (2 * i / embedding_dimensions)
            pe[pos, i] = math.sin(angle)
            pe[pos, i + 1] = math.cos(angle)
    return pe


_PE_NP = make_pe_table_np()  # (max_seq_len, E) float32, host-side constant


# ----------------------------- Pallas kernel -----------------------------
def pos_enc_kernel(x_ref, pe_ref, o_ref):
    # x_ref / pe_ref / o_ref: identical lane-dense slabs -> one fused VPU mul+add,
    # full-width unmasked stores.
    o_ref[...] = x_ref[...] * jnp.float32(_SCALE) + pe_ref[...]


# ------------------------------ jitted wrapper ------------------------------
@jax.jit
def positional_encoding_pallas(x):
    B, S, E = x.shape
    total = B * S * E
    # Prefer a lane-dense (total//128, 128) slab (4/8 sublane density at this size);
    # fall back to (B, S*E) rows if total isn't a multiple of 128.
    if total % 128 == 0:
        rows, cols = total // 128, 128
    else:
        rows, cols = B, S * E

    x_flat = x.reshape(rows, cols)
    # Trace-time numpy: slice to seq_len, broadcast over batch, flatten to the same
    # slab as x.  Becomes a compile-time constant of this jitted function.
    pe_flat = jnp.asarray(
        np.broadcast_to(_PE_NP[:S][None, :, :], (B, S, E)).reshape(rows, cols)
    )

    out_flat = pl.pallas_call(
        pos_enc_kernel,
        out_shape=jax.ShapeDtypeStruct((rows, cols), x.dtype),
        in_specs=[
            pl.BlockSpec(memory_space=pltpu.MemorySpace.VMEM),  # x slab (whole array)
            pl.BlockSpec(memory_space=pltpu.MemorySpace.VMEM),  # PE slab (constant)
        ],
        out_specs=pl.BlockSpec(memory_space=pltpu.MemorySpace.VMEM),
        input_output_aliases={0: 0},  # output reuses x_flat's buffer
    )(x_flat, pe_flat)
    # TODO(synk): if B/S grow, switch to a 1-D grid over (tb, cols) row tiles
    # (tb multiple of 8, dimension_semantics=("parallel",)) with PE kept as a
    # VMEM-resident (1, S*E) block instead of pre-broadcasting it over B.
    return out_flat.reshape(B, S, E)


# ------------------------------ pure-JAX reference ------------------------------
def positional_encoding_ref(x):
    S = x.shape[1]
    return x * jnp.float32(_SCALE) + jnp.asarray(_PE_NP[:S])[None, :, :]


# ---------------------------------- main ----------------------------------
if __name__ == "__main__":
    key = jax.random.PRNGKey(0)
    B, S, E = 2, 8, embedding_dimensions
    x = jax.random.normal(key, (B, S, E), dtype=jnp.float32)

    out = positional_encoding_pallas(x)
    out = jax.block_until_ready(out)

    ref = positional_encoding_ref(x)
    np.testing.assert_allclose(np.asarray(out), np.asarray(ref), atol=1e-6, rtol=1e-6)
    print("KERNEL_OK")
</pallas_src>

<mosaic_0001>
module attributes {stable_mosaic.version = 11 : i64} {
  func.func @pos_enc_kernel(%arg0: memref<4x128xf32, #tpu.memory_space<vmem>>, %arg1: memref<4x128xf32, #tpu.memory_space<vmem>>, %arg2: memref<4x128xf32, #tpu.memory_space<vmem>>) attributes {dimension_semantics = [], scalar_prefetch = 0 : i64, scratch_operands = 0 : i64, tpu.core_type = #tpu.core_type<tc>} {
    %c0 = arith.constant 0 : index
    %c0_0 = arith.constant 0 : index
    %0 = vector.load %arg0[%c0, %c0_0] : memref<4x128xf32, #tpu.memory_space<vmem>>, vector<4x128xf32>
    %cst = arith.constant 5.65685415 : f32
    %1 = vector.broadcast %cst : f32 to vector<4x128xf32>
    %2 = arith.mulf %0, %1 : vector<4x128xf32>
    %c0_1 = arith.constant 0 : index
    %c0_2 = arith.constant 0 : index
    %3 = vector.load %arg1[%c0_1, %c0_2] : memref<4x128xf32, #tpu.memory_space<vmem>>, vector<4x128xf32>
    %4 = arith.addf %2, %3 : vector<4x128xf32>
    %c0_3 = arith.constant 0 : index
    %c0_4 = arith.constant 0 : index
    %5 = vector.load %arg2[%c0_3, %c0_4] : memref<4x128xf32, #tpu.memory_space<vmem>>, vector<4x128xf32>
    tpu.vector_store %arg2[%c0_3, %c0_4], %4 {strides = array<i32>} : memref<4x128xf32, #tpu.memory_space<vmem>>, vector<4x128xf32>,
    return
  }
}

</mosaic_0001>

<bundles_post_ra>
// kernel: positional_encoding_pallas.1
= control target key start
LH: loop header
LB: loop body
LE: loop exit
PB: predicated region body
PF: predicated region fallthrough
CT: control target
= control target key end

     0   :  { %s44_s0 = inlined_call_operand.vmem [shape: f32[4,128], index: 0, kind: input, shape index: {}, may-alias: {0,2}]   ;;  %s45_s1 = inlined_call_operand.vmem [shape: f32[4,128], index: 1, kind: input, shape index: {}]   ;;  %s46_s2 = inlined_call_operand.vmem [shape: f32[4,128], index: 2, kind: output, shape index: {}, may-alias: {0,2}]  }
   0x1   :  { %v11_v0 = vld [vmem:[%s44_s0] sm:$0xf] }
   0x2   :  { %v13_v1 = vld [vmem:[%s45_s1] sm:$0xf]  ;;  %v12_v2 = vmul.f32 5.656854, %v11_v0 }
   0x4   :  { %v14_v3 = vadd.f32 %v13_v1, %v12_v2 }
   0x6   :  { %15 = vst [vmem:[%s46_s2] sm:$0xf] %v14_v3 }

</bundles_post_ra>
